<compile_context>
chip_gen: v5e
topology: v5e:2x2
jax: 0.10.0
libtpu: 0.0.40
codegen_flags: <defaults>
</compile_context>

<pallas_src>
import functools

import jax
import jax.numpy as jnp
from jax.experimental import pallas as pl
from jax.experimental.pallas import tpu as pltpu


# ----------------------------------------------------------------------------
# Fused SemanticMemory kernel
# ----------------------------------------------------------------------------
def semantic_memory_kernel(
    lanes_ref,      # (B*N_lanes, F_lane)
    adj_ref,        # (B*N_lanes, B*N_lanes)  block-diagonal, row-normalized
    lm_ref,         # (B*N_lm, F_lm)
    str_ref,        # (B*N_str, E)  mean-pooled char embeddings
    map_w_in_ref, map_b_in_ref, map_w_msg_ref, map_b_msg_ref,
    lm_w1_ref, lm_b1_ref, lm_w2_ref, lm_b2_ref,
    str_w_ref, str_b_ref,
    out_ref,        # (B*N_total, D)  per-batch token layout: [lanes | lm | str]
    *, batch, n_lanes, n_lm, n_str,
):
    # ---- map branch: embed -> ReLU -> message passing -> linear -> ReLU -> residual
    h = jnp.dot(lanes_ref[...], map_w_in_ref[...],
                preferred_element_type=jnp.float32) + map_b_in_ref[...]
    h = jnp.maximum(h, 0.0)
    m = jnp.dot(adj_ref[...], h, preferred_element_type=jnp.float32)
    u = jnp.dot(m, map_w_msg_ref[...],
                preferred_element_type=jnp.float32) + map_b_msg_ref[...]
    map_out = jnp.maximum(u, 0.0) + h                            # (B*N_lanes, D)

    # ---- landmark branch: 2-layer MLP
    hl = jnp.dot(lm_ref[...], lm_w1_ref[...],
                 preferred_element_type=jnp.float32) + lm_b1_ref[...]
    hl = jnp.maximum(hl, 0.0)
    lm_out = jnp.dot(hl, lm_w2_ref[...],
                     preferred_element_type=jnp.float32) + lm_b2_ref[...]    # (B*N_lm, D)

    # ---- street branch: linear + ReLU on pooled char embeddings
    st = jnp.dot(str_ref[...], str_w_ref[...],
                 preferred_element_type=jnp.float32) + str_b_ref[...]
    str_out = jnp.maximum(st, 0.0)                               # (B*N_str, D)

    # ---- write directly into the concatenated output (replaces torch.cat dim=1)
    n_total = n_lanes + n_lm + n_str
    for b in range(batch):   # static, trace-time unrolled (batch is tiny)
        base = b * n_total
        out_ref[base:base + n_lanes, :] = \
            map_out[b * n_lanes:(b + 1) * n_lanes, :]
        out_ref[base + n_lanes:base + n_lanes + n_lm, :] = \
            lm_out[b * n_lm:(b + 1) * n_lm, :]
        out_ref[base + n_lanes + n_lm:base + n_total, :] = \
            str_out[b * n_str:(b + 1) * n_str, :]


# ----------------------------------------------------------------------------
# Wrapper: JAX glue (embedding gather + mean pool), batch folding, pallas_call
# ----------------------------------------------------------------------------
def semantic_memory_forward(lanes, adj, landmarks, street_tokens, params):
    B, N_lanes, F_lane = lanes.shape
    _, N_lm, F_lm = landmarks.shape
    _, N_str, L_tok = street_tokens.shape
    D = params["map_w_in"].shape[1]
    E = params["str_emb_tab"].shape[1]
    N_total = N_lanes + N_lm + N_str

    # Embedding lookup + mean pool over char tokens (JAX glue; replaces the
    # mostly-zero pooling matmul and removes one kernel input stream).
    tok_emb = jnp.take(params["str_emb_tab"], street_tokens, axis=0)   # (B, N_str, L_tok, E)
    str_pooled = jnp.mean(tok_emb, axis=2).reshape(B * N_str, E)

    # Fold batch into the matmul M-dim: flatten inputs; block-diagonalize the
    # shared per-batch adjacency so one matmul covers the whole batch.
    lanes_flat = lanes.reshape(B * N_lanes, F_lane)
    lm_flat = landmarks.reshape(B * N_lm, F_lm)
    adj_bd = jnp.kron(jnp.eye(B, dtype=adj.dtype), adj)                # (B*N_lanes, B*N_lanes)

    kernel = functools.partial(
        semantic_memory_kernel,
        batch=B, n_lanes=N_lanes, n_lm=N_lm, n_str=N_str,
    )
    vmem = pl.BlockSpec(memory_space=pltpu.MemorySpace.VMEM)           # whole array in VMEM
    out_flat = pl.pallas_call(
        kernel,
        out_shape=jax.ShapeDtypeStruct((B * N_total, D), jnp.float32),
        in_specs=[vmem] * 14,
        out_specs=vmem,
    )(lanes_flat, adj_bd, lm_flat, str_pooled,
      params["map_w_in"], params["map_b_in"],
      params["map_w_msg"], params["map_b_msg"],
      params["lm_w1"], params["lm_b1"], params["lm_w2"], params["lm_b2"],
      params["str_w"], params["str_b"])

    # Metadata-only reshape (row-major leading-dim split) back to (B, N_total, D).
    return out_flat.reshape(B, N_total, D)


# ----------------------------------------------------------------------------
# Pure-JAX reference (for correctness check)
# ----------------------------------------------------------------------------
def semantic_memory_reference(lanes, adj, landmarks, street_tokens, params):
    h = jnp.maximum(jnp.einsum("bnf,fd->bnd", lanes, params["map_w_in"])
                    + params["map_b_in"], 0.0)
    m = jnp.einsum("ij,bjd->bid", adj, h)
    u = jnp.maximum(jnp.einsum("bnd,de->bne", m, params["map_w_msg"])
                    + params["map_b_msg"], 0.0)
    map_emb = u + h
    hl = jnp.maximum(jnp.einsum("bnf,fh->bnh", landmarks, params["lm_w1"])
                     + params["lm_b1"], 0.0)
    lm_emb = jnp.einsum("bnh,hd->bnd", hl, params["lm_w2"]) + params["lm_b2"]
    tok = jnp.take(params["str_emb_tab"], street_tokens, axis=0)
    pooled = jnp.mean(tok, axis=2)
    str_emb = jnp.maximum(jnp.einsum("bne,ed->bnd", pooled, params["str_w"])
                          + params["str_b"], 0.0)
    return jnp.concatenate((map_emb, lm_emb, str_emb), axis=1)


if __name__ == "__main__":
    # Small, deterministic shapes
    B = 2           # batch
    N_lanes = 8     # number of lanes
    F_lane = 16     # lane feature size
    N_lm = 4        # number of landmarks
    F_lm = 8        # landmark feature size
    N_str = 4       # number of street names
    L_tok = 6       # char tokens per street name
    V = 32          # char vocab
    E = 8           # char embedding dim
    H = 32          # MLP hidden
    D = 32          # d_emb

    key = jax.random.PRNGKey(0)
    keys = jax.random.split(key, 12)

    # Inputs
    lanes = jax.random.normal(keys[0], (B, N_lanes, F_lane), dtype=jnp.float32)
    landmarks = jax.random.normal(keys[1], (B, N_lm, F_lm), dtype=jnp.float32)
    street_tokens = jax.random.randint(keys[2], (B, N_str, L_tok), 0, V, dtype=jnp.int32)

    # edge_index (SparseTensor) densified: ring adjacency + self loops, row-normalized
    eye = jnp.eye(N_lanes, dtype=jnp.float32)
    ring = jnp.roll(eye, 1, axis=1) + jnp.roll(eye, -1, axis=1)
    adj = eye + ring
    adj = adj / jnp.sum(adj, axis=1, keepdims=True)

    # Deterministic parameters
    params = {
        "map_w_in":  0.1 * jax.random.normal(keys[3], (F_lane, D), dtype=jnp.float32),
        "map_b_in":  jnp.zeros((1, D), dtype=jnp.float32),
        "map_w_msg": 0.1 * jax.random.normal(keys[4], (D, D), dtype=jnp.float32),
        "map_b_msg": jnp.zeros((1, D), dtype=jnp.float32),
        "lm_w1":     0.1 * jax.random.normal(keys[5], (F_lm, H), dtype=jnp.float32),
        "lm_b1":     jnp.zeros((1, H), dtype=jnp.float32),
        "lm_w2":     0.1 * jax.random.normal(keys[6], (H, D), dtype=jnp.float32),
        "lm_b2":     jnp.zeros((1, D), dtype=jnp.float32),
        "str_emb_tab": 0.1 * jax.random.normal(keys[7], (V, E), dtype=jnp.float32),
        "str_w":     0.1 * jax.random.normal(keys[8], (E, D), dtype=jnp.float32),
        "str_b":     jnp.zeros((1, D), dtype=jnp.float32),
    }

    fwd = jax.jit(semantic_memory_forward)
    out = jax.block_until_ready(fwd(lanes, adj, landmarks, street_tokens, params))

    expected_shape = (B, N_lanes + N_lm + N_str, D)
    assert out.shape == expected_shape, (out.shape, expected_shape)
    assert bool(jnp.all(jnp.isfinite(out)))

    ref = semantic_memory_reference(lanes, adj, landmarks, street_tokens, params)
    assert bool(jnp.allclose(out, ref, rtol=1e-5, atol=1e-5)), float(
        jnp.max(jnp.abs(out - ref)))

    print("KERNEL_OK")
</pallas_src>

<mosaic_0001>
module attributes {stable_mosaic.version = 11 : i64} {
  func.func @semantic_memory_kernel(%arg0: memref<16x16xf32, #tpu.memory_space<vmem>>, %arg1: memref<16x16xf32, #tpu.memory_space<vmem>>, %arg2: memref<8x8xf32, #tpu.memory_space<vmem>>, %arg3: memref<8x8xf32, #tpu.memory_space<vmem>>, %arg4: memref<16x32xf32, #tpu.memory_space<vmem>>, %arg5: memref<1x32xf32, #tpu.memory_space<vmem>>, %arg6: memref<32x32xf32, #tpu.memory_space<vmem>>, %arg7: memref<1x32xf32, #tpu.memory_space<vmem>>, %arg8: memref<8x32xf32, #tpu.memory_space<vmem>>, %arg9: memref<1x32xf32, #tpu.memory_space<vmem>>, %arg10: memref<32x32xf32, #tpu.memory_space<vmem>>, %arg11: memref<1x32xf32, #tpu.memory_space<vmem>>, %arg12: memref<8x32xf32, #tpu.memory_space<vmem>>, %arg13: memref<1x32xf32, #tpu.memory_space<vmem>>, %arg14: memref<32x32xf32, #tpu.memory_space<vmem>>) attributes {dimension_semantics = [], scalar_prefetch = 0 : i64, scratch_operands = 0 : i64, tpu.core_type = #tpu.core_type<tc>} {
    %c0 = arith.constant 0 : index
    %c0_0 = arith.constant 0 : index
    %0 = vector.load %arg0[%c0, %c0_0] : memref<16x16xf32, #tpu.memory_space<vmem>>, vector<16x16xf32>
    %c0_1 = arith.constant 0 : index
    %c0_2 = arith.constant 0 : index
    %1 = vector.load %arg4[%c0_1, %c0_2] : memref<16x32xf32, #tpu.memory_space<vmem>>, vector<16x32xf32>
    %cst = arith.constant dense<0.000000e+00> : vector<16x32xf32>
    %2 = tpu.matmul %0, %1, %cst {dimension_numbers = #tpu.dot_dimension_numbers<[1], [0], [0], [1], [0, 0, 1, 1], [], []>} : vector<16x16xf32>, vector<16x32xf32>, vector<16x32xf32> -> vector<16x32xf32>
    %c0_3 = arith.constant 0 : index
    %c0_4 = arith.constant 0 : index
    %3 = vector.load %arg5[%c0_3, %c0_4] : memref<1x32xf32, #tpu.memory_space<vmem>>, vector<1x32xf32>
    %4 = vector.broadcast %3 : vector<1x32xf32> to vector<16x32xf32>
    %5 = arith.addf %2, %4 : vector<16x32xf32>
    %cst_5 = arith.constant 0.000000e+00 : f32
    %6 = vector.broadcast %cst_5 : f32 to vector<16x32xf32>
    %7 = arith.maximumf %5, %6 : vector<16x32xf32>
    %c0_6 = arith.constant 0 : index
    %c0_7 = arith.constant 0 : index
    %8 = vector.load %arg1[%c0_6, %c0_7] : memref<16x16xf32, #tpu.memory_space<vmem>>, vector<16x16xf32>
    %cst_8 = arith.constant dense<0.000000e+00> : vector<16x32xf32>
    %9 = tpu.matmul %8, %7, %cst_8 {dimension_numbers = #tpu.dot_dimension_numbers<[1], [0], [0], [1], [0, 0, 1, 1], [], []>} : vector<16x16xf32>, vector<16x32xf32>, vector<16x32xf32> -> vector<16x32xf32>
    %c0_9 = arith.constant 0 : index
    %c0_10 = arith.constant 0 : index
    %10 = vector.load %arg6[%c0_9, %c0_10] : memref<32x32xf32, #tpu.memory_space<vmem>>, vector<32x32xf32>
    %cst_11 = arith.constant dense<0.000000e+00> : vector<16x32xf32>
    %11 = tpu.matmul %9, %10, %cst_11 {dimension_numbers = #tpu.dot_dimension_numbers<[1], [0], [0], [1], [0, 0, 1, 1], [], []>} : vector<16x32xf32>, vector<32x32xf32>, vector<16x32xf32> -> vector<16x32xf32>
    %c0_12 = arith.constant 0 : index
    %c0_13 = arith.constant 0 : index
    %12 = vector.load %arg7[%c0_12, %c0_13] : memref<1x32xf32, #tpu.memory_space<vmem>>, vector<1x32xf32>
    %13 = vector.broadcast %12 : vector<1x32xf32> to vector<16x32xf32>
    %14 = arith.addf %11, %13 : vector<16x32xf32>
    %cst_14 = arith.constant 0.000000e+00 : f32
    %15 = vector.broadcast %cst_14 : f32 to vector<16x32xf32>
    %16 = arith.maximumf %14, %15 : vector<16x32xf32>
    %17 = arith.addf %16, %7 : vector<16x32xf32>
    %c0_15 = arith.constant 0 : index
    %c0_16 = arith.constant 0 : index
    %18 = vector.load %arg2[%c0_15, %c0_16] : memref<8x8xf32, #tpu.memory_space<vmem>>, vector<8x8xf32>
    %c0_17 = arith.constant 0 : index
    %c0_18 = arith.constant 0 : index
    %19 = vector.load %arg8[%c0_17, %c0_18] : memref<8x32xf32, #tpu.memory_space<vmem>>, vector<8x32xf32>
    %cst_19 = arith.constant dense<0.000000e+00> : vector<8x32xf32>
    %20 = tpu.matmul %18, %19, %cst_19 {dimension_numbers = #tpu.dot_dimension_numbers<[1], [0], [0], [1], [0, 0, 1, 1], [], []>} : vector<8x8xf32>, vector<8x32xf32>, vector<8x32xf32> -> vector<8x32xf32>
    %c0_20 = arith.constant 0 : index
    %c0_21 = arith.constant 0 : index
    %21 = vector.load %arg9[%c0_20, %c0_21] : memref<1x32xf32, #tpu.memory_space<vmem>>, vector<1x32xf32>
    %22 = vector.broadcast %21 : vector<1x32xf32> to vector<8x32xf32>
    %23 = arith.addf %20, %22 : vector<8x32xf32>
    %cst_22 = arith.constant 0.000000e+00 : f32
    %24 = vector.broadcast %cst_22 : f32 to vector<8x32xf32>
    %25 = arith.maximumf %23, %24 : vector<8x32xf32>
    %c0_23 = arith.constant 0 : index
    %c0_24 = arith.constant 0 : index
    %26 = vector.load %arg10[%c0_23, %c0_24] : memref<32x32xf32, #tpu.memory_space<vmem>>, vector<32x32xf32>
    %cst_25 = arith.constant dense<0.000000e+00> : vector<8x32xf32>
    %27 = tpu.matmul %25, %26, %cst_25 {dimension_numbers = #tpu.dot_dimension_numbers<[1], [0], [0], [1], [0, 0, 1, 1], [], []>} : vector<8x32xf32>, vector<32x32xf32>, vector<8x32xf32> -> vector<8x32xf32>
    %c0_26 = arith.constant 0 : index
    %c0_27 = arith.constant 0 : index
    %28 = vector.load %arg11[%c0_26, %c0_27] : memref<1x32xf32, #tpu.memory_space<vmem>>, vector<1x32xf32>
    %29 = vector.broadcast %28 : vector<1x32xf32> to vector<8x32xf32>
    %30 = arith.addf %27, %29 : vector<8x32xf32>
    %c0_28 = arith.constant 0 : index
    %c0_29 = arith.constant 0 : index
    %31 = vector.load %arg3[%c0_28, %c0_29] : memref<8x8xf32, #tpu.memory_space<vmem>>, vector<8x8xf32>
    %c0_30 = arith.constant 0 : index
    %c0_31 = arith.constant 0 : index
    %32 = vector.load %arg12[%c0_30, %c0_31] : memref<8x32xf32, #tpu.memory_space<vmem>>, vector<8x32xf32>
    %cst_32 = arith.constant dense<0.000000e+00> : vector<8x32xf32>
    %33 = tpu.matmul %31, %32, %cst_32 {dimension_numbers = #tpu.dot_dimension_numbers<[1], [0], [0], [1], [0, 0, 1, 1], [], []>} : vector<8x8xf32>, vector<8x32xf32>, vector<8x32xf32> -> vector<8x32xf32>
    %c0_33 = arith.constant 0 : index
    %c0_34 = arith.constant 0 : index
    %34 = vector.load %arg13[%c0_33, %c0_34] : memref<1x32xf32, #tpu.memory_space<vmem>>, vector<1x32xf32>
    %35 = vector.broadcast %34 : vector<1x32xf32> to vector<8x32xf32>
    %36 = arith.addf %33, %35 : vector<8x32xf32>
    %cst_35 = arith.constant 0.000000e+00 : f32
    %37 = vector.broadcast %cst_35 : f32 to vector<8x32xf32>
    %38 = arith.maximumf %36, %37 : vector<8x32xf32>
    %39 = vector.extract_strided_slice %17 {offsets = [0, 0], sizes = [8, 32], strides = [1, 1]} : vector<16x32xf32> to vector<8x32xf32>
    %c0_36 = arith.constant 0 : index
    %c0_37 = arith.constant 0 : index
    %40 = vector.load %arg14[%c0_36, %c0_37] : memref<32x32xf32, #tpu.memory_space<vmem>>, vector<8x32xf32>
    tpu.vector_store %arg14[%c0_36, %c0_37], %39 {strides = array<i32>} : memref<32x32xf32, #tpu.memory_space<vmem>>, vector<8x32xf32>,
    %41 = vector.extract_strided_slice %30 {offsets = [0, 0], sizes = [4, 32], strides = [1, 1]} : vector<8x32xf32> to vector<4x32xf32>
    %c8 = arith.constant 8 : index
    %c0_38 = arith.constant 0 : index
    %42 = vector.load %arg14[%c8, %c0_38] : memref<32x32xf32, #tpu.memory_space<vmem>>, vector<4x32xf32>
    tpu.vector_store %arg14[%c8, %c0_38], %41 {strides = array<i32>} : memref<32x32xf32, #tpu.memory_space<vmem>>, vector<4x32xf32>,
    %43 = vector.extract_strided_slice %38 {offsets = [0, 0], sizes = [4, 32], strides = [1, 1]} : vector<8x32xf32> to vector<4x32xf32>
    %c12 = arith.constant 12 : index
    %c0_39 = arith.constant 0 : index
    %44 = vector.load %arg14[%c12, %c0_39] : memref<32x32xf32, #tpu.memory_space<vmem>>, vector<4x32xf32>
    tpu.vector_store %arg14[%c12, %c0_39], %43 {strides = array<i32>} : memref<32x32xf32, #tpu.memory_space<vmem>>, vector<4x32xf32>,
    %45 = vector.extract_strided_slice %17 {offsets = [8, 0], sizes = [8, 32], strides = [1, 1]} : vector<16x32xf32> to vector<8x32xf32>
    %c16 = arith.constant 16 : index
    %c0_40 = arith.constant 0 : index
    %46 = vector.load %arg14[%c16, %c0_40] : memref<32x32xf32, #tpu.memory_space<vmem>>, vector<8x32xf32>
    tpu.vector_store %arg14[%c16, %c0_40], %45 {strides = array<i32>} : memref<32x32xf32, #tpu.memory_space<vmem>>, vector<8x32xf32>,
    %47 = vector.extract_strided_slice %30 {offsets = [4, 0], sizes = [4, 32], strides = [1, 1]} : vector<8x32xf32> to vector<4x32xf32>
    %c24 = arith.constant 24 : index
    %c0_41 = arith.constant 0 : index
    %48 = vector.load %arg14[%c24, %c0_41] : memref<32x32xf32, #tpu.memory_space<vmem>>, vector<4x32xf32>
    tpu.vector_store %arg14[%c24, %c0_41], %47 {strides = array<i32>} : memref<32x32xf32, #tpu.memory_space<vmem>>, vector<4x32xf32>,
    %49 = vector.extract_strided_slice %38 {offsets = [4, 0], sizes = [4, 32], strides = [1, 1]} : vector<8x32xf32> to vector<4x32xf32>
    %c28 = arith.constant 28 : index
    %c0_42 = arith.constant 0 : index
    %50 = vector.load %arg14[%c28, %c0_42] : memref<32x32xf32, #tpu.memory_space<vmem>>, vector<4x32xf32>
    tpu.vector_store %arg14[%c28, %c0_42], %49 {strides = array<i32>} : memref<32x32xf32, #tpu.memory_space<vmem>>, vector<4x32xf32>,
    return
  }
}

</mosaic_0001>

<bundles_post_ra>
// kernel: semantic_memory_forward.1
= control target key start
LH: loop header
LB: loop body
LE: loop exit
PB: predicated region body
PF: predicated region fallthrough
CT: control target
= control target key end

     0   :  { %vm56_vm0 = vcmask 130048   ;;  %s483_s0 = inlined_call_operand.vmem [shape: f32[16,16], index: 0, kind: input, shape index: {}]   ;;  %s484_s1 = inlined_call_operand.vmem [shape: f32[16,16], index: 1, kind: input, shape index: {}]   ;;  %s485_s2 = inlined_call_operand.vmem [shape: f32[8,8], index: 2, kind: input, shape index: {}]   ;;  %s486_s3 = inlined_call_operand.vmem [shape: f32[8,8], index: 3, kind: input, shape index: {}]   ;;  %s487_s4 = inlined_call_operand.vmem [shape: f32[16,32], index: 4, kind: input, shape index: {}]   ;;  %s488_s5 = inlined_call_operand.vmem [shape: f32[1,32], index: 5, kind: input, shape index: {}]   ;;  %s489_s6 = inlined_call_operand.vmem [shape: f32[32,32], index: 6, kind: input, shape index: {}]   ;;  %s490_s7 = inlined_call_operand.vmem [shape: f32[1,32], index: 7, kind: input, shape index: {}]   ;;  %s491_s8 = inlined_call_operand.vmem [shape: f32[8,32], index: 8, kind: input, shape index: {}]   ;;  %s492_s9 = inlined_call_operand.vmem [shape: f32[1,32], index: 9, kind: input, shape index: {}]   ;;  %s493_s10 = inlined_call_operand.vmem [shape: f32[32,32], index: 10, kind: input, shape index: {}]   ;;  %s494_s11 = inlined_call_operand.vmem [shape: f32[1,32], index: 11, kind: input, shape index: {}]   ;;  %s495_s12 = inlined_call_operand.vmem [shape: f32[8,32], index: 12, kind: input, shape index: {}]   ;;  %s496_s13 = inlined_call_operand.vmem [shape: f32[1,32], index: 13, kind: input, shape index: {}]   ;;  %s497_s14 = inlined_call_operand.hbm [shape: f32[32,32], index: 14, kind: output, shape index: {}]  }
   0x1   :  { %v51_v0 = vld [vmem:[%s487_s4 + $0x8] sm:$0xff]  ;;  %v50_v1 = vld [vmem:[%s487_s4] sm:$0xff] }
   0x2   :  { %77 = vmatpush.msra.mxu0 %v51_v0  ;;  %v48_v2 = vld [vmem:[%s483_s0] sm:$0xff] }
   0x4   :  { %78 = vmatpush.msra.mxu0 %v50_v1 }
   0x5   :  { %19 = vsyncpa [#allocation3], 0  ;;  %279 = vmatmul.msk.f32.vlgmr.msra.gmra.mxu0 %vm56_vm0, %v48_v2  ;;  %v49_v3 = vld [vmem:[%s483_s0 + $0x8] sm:$0xff]  ;;  %v162_v4 = vld [vmem:[%s491_s8] sm:$0xff]  ;;  %vm167_vm1 = vcmask 64512   ;;  %vm127_vm2 = vcmask 261120  }
   0x6   :  { %186 = vmatpush.msra.mxu3 %v162_v4  ;;  %v161_v5 = vld [vmem:[%s485_s2] sm:$0xff]  ;;  %v122_v6 = vld [vmem:[%s489_s6 + $0x18] sm:$0xff]  ;;  %v121_v8 = vld [vmem:[%s489_s6 + $0x10] sm:$0xff]  ;;  %vm254_vm3 = vcmask 257024   ;;  %vm258_vm4 = vcmask 261124   ;;  %s267_s30 = sshll.u32 %s497_s14, 4  ;;  %s268_s30 = int_to_ptr.hbm [resolvable:$true] %s267_s30 }
   0x7   :  { %285 = vmatmul.msk.f32.vlgmr.msra.gmra.mxu3 %vm167_vm1, %v161_v5  ;;  %v195_v7 = vld [vmem:[%s493_s10 + $0x18] sm:$0xff]  ;;  %146 = vmatpush.msra.mxu2 %v122_v6  ;;  %v194_v9 = vld [vmem:[%s493_s10 + $0x10] sm:$0xff]  ;;  %v120_v10 = vld [vmem:[%s489_s6 + $0x8] sm:$0xff]  ;;  %s324_s15 = smov 8  }
   0x8   :  { %215 = vmatpush.msrb.mxu3 %v195_v7  ;;  %v291_v12 = vld [vmem:[%s488_s5] ss:$0 sm:$0xff]  ;;  %v89_v19 = vld [vmem:[%s484_s1 + $0x8] sm:$0xff] }
   0x9   :  { %147 = vmatpush.msra.mxu2 %v121_v8  ;;  %v88_v18 = vld [vmem:[%s484_s1] sm:$0xff]  ;;  %v193_v20 = vld [vmem:[%s493_s10 + $0x8] sm:$0xff] }
   0xa   :  { %216 = vmatpush.msrb.mxu3 %v194_v9  ;;  %v292_v21 = vld [vmem:[%s492_s9] ss:$0 sm:$0xff] }
   0xb   :  { %148 = vmatpush.msra.mxu2 %v120_v10  ;;  %v119_v24 = vld [vmem:[%s489_s6] sm:$0xff] }
   0xc   :  { %217 = vmatpush.msrb.mxu3 %v193_v20  ;;  %v192_v26 = vld [vmem:[%s493_s10] sm:$0xff] }
   0xd   :  { %280 = vmatmul.msk.f32.gmra.mxu0 %vm56_vm0, %v49_v3  ;;  %149 = vmatpush.msra.mxu2 %v119_v24  ;;  %v224_v27 = vld [vmem:[%s495_s12] sm:$0xff] }
   0xe   :  { %218 = vmatpush.msrb.mxu3 %v192_v26  ;;  %v223_v28 = vld [vmem:[%s486_s3] sm:$0xff] }
   0xf   :  { %v294_v31 = vld [vmem:[%s494_s11] ss:$0 sm:$0xff]  ;;  %s322_s11 = smov [#allocation2]  }
  0x10   :  { %247 = vmatpush.msra.mxu3 %v224_v27  ;;  %v295_v34 = vld [vmem:[%s496_s13] ss:$0 sm:$0xff]  ;;  %s265_s29 = sshll.u32 %s322_s11, 4  ;;  %s266_s29 = int_to_ptr.vmem [resolvable:$true] %s265_s29 }
  0x11   :  { %v293_v38 = vld [vmem:[%s490_s7] ss:$0 sm:$0xff]  ;;  %s323_s7 = smov 128  }
  0x82   :  { %v80_v11 = vpop.f32.mrf.mxu0 }
  0x83   :  { %v81_v14 = vadd.f32 %v291_v12, %v80_v11 }
  0x85   :  { %v86_v17 = vmax.f32 %v81_v14, 0.0 }
  0x8a   :  { %v83_v13 = vpop.f32.mrf.mxu0  ;;  %v188_v22 = vpop.f32.mrf.mxu3 }
  0x8b   :  { %v84_v15 = vadd.f32 %v291_v12, %v83_v13  ;;  %v189_v23 = vadd.f32 %v292_v21, %v188_v22 }
  0x8d   :  { %v87_v16 = vmax.f32 %v84_v15, 0.0  ;;  %v191_v25 = vmax.f32 %v189_v23, 0.0 }
  0x8f   :  { %110 = vmatpush.msra.mxu1 %v87_v16  ;;  %286 = vmatmul.msk.f32.vlgmr.msrb.gmra.mxu3 %vm127_vm2, %v191_v25 }
  0x91   :  { %111 = vmatpush.msra.mxu1 %v86_v17 }
  0x92   :  { %281 = vmatmul.msk.f32.vlgmr.msra.gmra.mxu1 %vm56_vm0, %v88_v18 }
  0x97   :  { %287 = vmatmul.msk.f32.vlgmr.msra.gmra.mxu3 %vm167_vm1, %v223_v28 }
  0x9a   :  { %282 = vmatmul.msk.f32.gmra.mxu1 %vm56_vm0, %v89_v19 }
 0x10f   :  { %v113_v29 = vpop.f32.mrf.mxu1 }
 0x110   :  { %283 = vmatmul.msk.f32.vlgmr.msra.gmra.mxu2 %vm127_vm2, %v113_v29 }
 0x112   :  { %v220_v32 = vpop.f32.mrf.mxu3 }
 0x113   :  { %v221_v33 = vadd.f32 %v294_v31, %v220_v32 }
 0x115   :  { %255 = vst.msk [vmem:[#allocation2 + $0x8] sm:$0xf] %vm254_vm3, %v221_v33 }
 0x116   :  { %259 = vst.msk [vmem:[#allocation2 + $0x14] sm:$0xf0] %vm258_vm4, %v221_v33 }
 0x117   :  { %v116_v30 = vpop.f32.mrf.mxu1 }
 0x118   :  { %284 = vmatmul.msk.f32.gmra.mxu2 %vm127_vm2, %v116_v30 }
 0x11a   :  { %v249_v35 = vpop.f32.mrf.mxu3 }
 0x11b   :  { %v250_v36 = vadd.f32 %v295_v34, %v249_v35 }
 0x11d   :  { %v252_v37 = vmax.f32 %v250_v36, 0.0 }
 0x11f   :  { %256 = vst.msk [vmem:[#allocation2 + $0xc] sm:$0xf] %vm254_vm3, %v252_v37 }
 0x120   :  { %260 = vst.msk [vmem:[#allocation2 + $0x18] sm:$0xf0] %vm258_vm4, %v252_v37 }
 0x193   :  { %v151_v39 = vpop.f32.mrf.mxu2 }
 0x194   :  { %v152_v40 = vadd.f32 %v293_v38, %v151_v39 }
 0x196   :  { %v157_v41 = vmax.f32 %v152_v40, 0.0 }
 0x198   :  { %v159_v42 = vadd.f32 %v157_v41, %v86_v17 }
 0x19a   :  { %253 = vst.msk [vmem:[#allocation2] sm:$0xff] %vm127_vm2, %v159_v42 }
 0x19b   :  { %v154_v43 = vpop.f32.mrf.mxu2 }
 0x19c   :  { %v155_v44 = vadd.f32 %v293_v38, %v154_v43 }
 0x19e   :  { %v158_v45 = vmax.f32 %v155_v44, 0.0 }
 0x1a0   :  { %v160_v46 = vadd.f32 %v158_v45, %v87_v16 }
 0x1a2   :  { %257 = vst.msk [vmem:[#allocation2 + $0x10] sm:$0xff] %vm127_vm2, %v160_v46 }
 0x1a3   :  { %273 = dma.vmem_to_hbm [thread:$0]  %s266_s29, 512, %s268_s30, [#allocation3], %s323_s7, %s323_s7, %s324_s15  }
 0x1a4   :  { %320 = dma.done.wait [#allocation3], 512  }
 0x1a5   :  { %321 = vsyncadd [#allocation3], 4294966784 }
 0x1a6   :  { %278 = vsyncpa [#allocation3], 1 }

</bundles_post_ra>
